<compile_context>
chip_gen: v7x
topology: tpu7x:2x2x1
jax: 0.10.0
libtpu: 0.0.40
codegen_flags: <defaults>
</compile_context>

<pallas_src>
import jax
import jax.numpy as jnp
from jax.experimental import pallas as pl
from jax.experimental.pallas import tpu as pltpu


def mlp_kernel(x_ref, w1_ref, b1_ref, w2_ref, b2_ref, w3_ref, b3_ref,
               w4t_ref, b4_ref, o_ref):
    x = x_ref[...]                                                    # (1, TN) f32

    # fc1: (64,1) x (1,TN) with K=1 -> VPU broadcast FMA (outer product).
    h1 = jnp.maximum(w1_ref[...] * x + b1_ref[...], 0.0)             # (64, TN) f32

    # fc2: MXU matmul, bf16 operands, f32 accumulation, lane-dense result.
    h2 = jnp.dot(w2_ref[...], h1.astype(jnp.bfloat16),
                 preferred_element_type=jnp.float32)
    h2 = jnp.maximum(h2 + b2_ref[...], 0.0)                          # (32, TN) f32

    # fc3
    h3 = jnp.dot(w3_ref[...], h2.astype(jnp.bfloat16),
                 preferred_element_type=jnp.float32)
    h3 = jnp.maximum(h3 + b3_ref[...], 0.0)                          # (32, TN) f32

    # fc4 (1 output row, no activation): VPU mul + XLU cross-sublane reduce
    # instead of an MXU matmul.
    out = jnp.sum(w4t_ref[...] * h3, axis=0, keepdims=True) + b4_ref[...]  # (1, TN)

    o_ref[...] = out.astype(o_ref.dtype)


def base_regression(x, params, *, tn=8192, vmem_limit_bytes=None):
    """x: (N, 1) float32. Returns (N, 1) float32.

    tn: batch tile (lanes) per grid step; multiple of 128.  ~0.8 KB VMEM per
    batch element, so tn=8192 ~ 7 MiB/step.  For tn >= 32768 on v5e pass an
    explicit vmem_limit_bytes.  On v7x keep n/tn >= 2-4 so both TCs get work.
    """
    w1, b1, w2, b2, w3, b3, w4, b4 = params
    n = x.shape[0]

    # Free row-major bitcast (N,1) -> (1,N); no padding / scatter pass.
    xt = x.reshape(1, n).astype(jnp.float32)

    # Clamp the tile so tiny N doesn't allocate a huge VMEM tile.
    n_r128 = pl.cdiv(n, 128) * 128
    tn_eff = max(128, min(tn, n_r128))
    grid = (pl.cdiv(n, tn_eff),)

    # bf16 weights feed the MXU natively; biases stay f32 (added into the
    # f32 accumulators).  fc1 / fc4 stay on the f32 VPU/XLU path.
    w2c = w2.astype(jnp.bfloat16)
    w3c = w3.astype(jnp.bfloat16)
    w4t = w4.T.astype(jnp.float32)        # (32, 1) column for the VPU/XLU path

    def stream_spec():
        return pl.BlockSpec((1, tn_eff), lambda i: (0, i))

    def resident_spec(arr):
        # Full-array block, constant block index -> fetched once, VMEM-resident.
        nd = len(arr.shape)
        return pl.BlockSpec(arr.shape, lambda i, _nd=nd: (0,) * _nd)

    out_t = pl.pallas_call(
        mlp_kernel,
        out_shape=jax.ShapeDtypeStruct((1, n), jnp.float32),
        grid=grid,
        in_specs=[
            stream_spec(),        # x tile
            resident_spec(w1), resident_spec(b1),
            resident_spec(w2c), resident_spec(b2),
            resident_spec(w3c), resident_spec(b3),
            resident_spec(w4t), resident_spec(b4),
        ],
        out_specs=stream_spec(),
        compiler_params=pltpu.CompilerParams(
            dimension_semantics=("parallel",),
            vmem_limit_bytes=vmem_limit_bytes),
    )(xt, w1, b1, w2c, b2, w3c, b3, w4t, b4)

    return out_t.reshape(n, 1)


def init_params(key):
    """nn.Linear-style init (uniform +/- 1/sqrt(fan_in)).

    Weights are (out_features, in_features); biases are (out_features, 1)
    columns so they broadcast over the batch lanes.
    """
    ks = jax.random.split(key, 8)

    def linear(kw, kb, fan_in, fan_out):
        bound = 1.0 / jnp.sqrt(float(fan_in))
        w = jax.random.uniform(kw, (fan_out, fan_in), jnp.float32, -bound, bound)
        b = jax.random.uniform(kb, (fan_out, 1), jnp.float32, -bound, bound)
        return w, b

    w1, b1 = linear(ks[0], ks[1], 1, 64)
    w2, b2 = linear(ks[2], ks[3], 64, 32)
    w3, b3 = linear(ks[4], ks[5], 32, 32)
    w4, b4 = linear(ks[6], ks[7], 32, 1)
    return (w1, b1, w2, b2, w3, b3, w4, b4)


def _reference(x, params):
    """Pure-JAX f32 reference with PyTorch (batch, features) semantics."""
    w1, b1, w2, b2, w3, b3, w4, b4 = params
    h = jnp.maximum(x @ w1.T + b1.T, 0.0)
    h = jnp.maximum(h @ w2.T + b2.T, 0.0)
    h = jnp.maximum(h @ w3.T + b3.T, 0.0)
    return h @ w4.T + b4.T


if __name__ == "__main__":
    key = jax.random.PRNGKey(0)
    k_x, k_p = jax.random.split(key)

    # N deliberately not a multiple of the tile so the ragged last block and a
    # multi-step grid (6 steps at tn=512, enough to feed both v7x TCs) are both
    # exercised.  Production use should keep the larger default tn.
    N = 3000
    x = jax.random.normal(k_x, (N, 1), jnp.float32)
    params = init_params(k_p)

    out = base_regression(x, params, tn=512)
    out = jax.block_until_ready(out)

    ref = _reference(x, params)
    assert out.shape == (N, 1)
    # bf16 MXU operands (f32 accumulate) -> loosened tolerance vs the f32 ref.
    assert jnp.allclose(out, ref, atol=5e-2, rtol=5e-2), (
        float(jnp.max(jnp.abs(out - ref))))
    print("KERNEL_OK")
</pallas_src>

<mosaic_0001>
module attributes {stable_mosaic.version = 11 : i64} {
  func.func @mlp_kernel(%arg0: i32, %arg1: memref<1x512xf32, #tpu.memory_space<vmem>>, %arg2: memref<64x1xf32, #tpu.memory_space<vmem>>, %arg3: memref<64x1xf32, #tpu.memory_space<vmem>>, %arg4: memref<32x64xbf16, #tpu.memory_space<vmem>>, %arg5: memref<32x1xf32, #tpu.memory_space<vmem>>, %arg6: memref<32x32xbf16, #tpu.memory_space<vmem>>, %arg7: memref<32x1xf32, #tpu.memory_space<vmem>>, %arg8: memref<32x1xf32, #tpu.memory_space<vmem>>, %arg9: memref<1x1xf32, #tpu.memory_space<vmem>>, %arg10: memref<1x512xf32, #tpu.memory_space<vmem>>) attributes {dimension_semantics = [#tpu.dimension_semantics<parallel>], iteration_bounds = array<i64: 6>, scalar_prefetch = 0 : i64, scratch_operands = 0 : i64, tpu.core_type = #tpu.core_type<tc>, window_params = [{transform_indices = @transform_0, window_bounds = array<i64: 1, 512>}, {pipeline_mode = #tpu.pipeline_mode<synchronous>, transform_indices = @transform_1, window_bounds = array<i64: 64, 1>}, {pipeline_mode = #tpu.pipeline_mode<synchronous>, transform_indices = @transform_2, window_bounds = array<i64: 64, 1>}, {pipeline_mode = #tpu.pipeline_mode<synchronous>, transform_indices = @transform_3, window_bounds = array<i64: 32, 64>}, {pipeline_mode = #tpu.pipeline_mode<synchronous>, transform_indices = @transform_4, window_bounds = array<i64: 32, 1>}, {pipeline_mode = #tpu.pipeline_mode<synchronous>, transform_indices = @transform_5, window_bounds = array<i64: 32, 32>}, {pipeline_mode = #tpu.pipeline_mode<synchronous>, transform_indices = @transform_6, window_bounds = array<i64: 32, 1>}, {pipeline_mode = #tpu.pipeline_mode<synchronous>, transform_indices = @transform_7, window_bounds = array<i64: 32, 1>}, {pipeline_mode = #tpu.pipeline_mode<synchronous>, transform_indices = @transform_8, window_bounds = array<i64: 1, 1>}, {transform_indices = @transform_9, window_bounds = array<i64: 1, 512>}]} {
    %c0 = arith.constant 0 : index
    %c0_0 = arith.constant 0 : index
    %0 = vector.load %arg1[%c0, %c0_0] : memref<1x512xf32, #tpu.memory_space<vmem>>, vector<1x512xf32>
    %c0_1 = arith.constant 0 : index
    %c0_2 = arith.constant 0 : index
    %1 = vector.load %arg2[%c0_1, %c0_2] : memref<64x1xf32, #tpu.memory_space<vmem>>, vector<64x1xf32>
    %2 = vector.broadcast %1 : vector<64x1xf32> to vector<64x512xf32>
    %3 = vector.broadcast %0 : vector<1x512xf32> to vector<64x512xf32>
    %4 = arith.mulf %2, %3 : vector<64x512xf32>
    %c0_3 = arith.constant 0 : index
    %c0_4 = arith.constant 0 : index
    %5 = vector.load %arg3[%c0_3, %c0_4] : memref<64x1xf32, #tpu.memory_space<vmem>>, vector<64x1xf32>
    %6 = vector.broadcast %5 : vector<64x1xf32> to vector<64x512xf32>
    %7 = arith.addf %4, %6 : vector<64x512xf32>
    %cst = arith.constant 0.000000e+00 : f32
    %8 = vector.broadcast %cst : f32 to vector<64x512xf32>
    %9 = arith.maximumf %7, %8 : vector<64x512xf32>
    %c0_5 = arith.constant 0 : index
    %c0_6 = arith.constant 0 : index
    %10 = vector.load %arg4[%c0_5, %c0_6] : memref<32x64xbf16, #tpu.memory_space<vmem>>, vector<32x64xbf16>
    %11 = arith.truncf %9 : vector<64x512xf32> to vector<64x512xbf16>
    %cst_7 = arith.constant dense<0.000000e+00> : vector<32x512xf32>
    %12 = tpu.matmul %10, %11, %cst_7 {dimension_numbers = #tpu.dot_dimension_numbers<[1], [0], [0], [1], [0, 0, 1, 1], [], []>} : vector<32x64xbf16>, vector<64x512xbf16>, vector<32x512xf32> -> vector<32x512xf32>
    %c0_8 = arith.constant 0 : index
    %c0_9 = arith.constant 0 : index
    %13 = vector.load %arg5[%c0_8, %c0_9] : memref<32x1xf32, #tpu.memory_space<vmem>>, vector<32x1xf32>
    %14 = vector.broadcast %13 : vector<32x1xf32> to vector<32x512xf32>
    %15 = arith.addf %12, %14 : vector<32x512xf32>
    %cst_10 = arith.constant 0.000000e+00 : f32
    %16 = vector.broadcast %cst_10 : f32 to vector<32x512xf32>
    %17 = arith.maximumf %15, %16 : vector<32x512xf32>
    %c0_11 = arith.constant 0 : index
    %c0_12 = arith.constant 0 : index
    %18 = vector.load %arg6[%c0_11, %c0_12] : memref<32x32xbf16, #tpu.memory_space<vmem>>, vector<32x32xbf16>
    %19 = arith.truncf %17 : vector<32x512xf32> to vector<32x512xbf16>
    %cst_13 = arith.constant dense<0.000000e+00> : vector<32x512xf32>
    %20 = tpu.matmul %18, %19, %cst_13 {dimension_numbers = #tpu.dot_dimension_numbers<[1], [0], [0], [1], [0, 0, 1, 1], [], []>} : vector<32x32xbf16>, vector<32x512xbf16>, vector<32x512xf32> -> vector<32x512xf32>
    %c0_14 = arith.constant 0 : index
    %c0_15 = arith.constant 0 : index
    %21 = vector.load %arg7[%c0_14, %c0_15] : memref<32x1xf32, #tpu.memory_space<vmem>>, vector<32x1xf32>
    %22 = vector.broadcast %21 : vector<32x1xf32> to vector<32x512xf32>
    %23 = arith.addf %20, %22 : vector<32x512xf32>
    %cst_16 = arith.constant 0.000000e+00 : f32
    %24 = vector.broadcast %cst_16 : f32 to vector<32x512xf32>
    %25 = arith.maximumf %23, %24 : vector<32x512xf32>
    %c0_17 = arith.constant 0 : index
    %c0_18 = arith.constant 0 : index
    %26 = vector.load %arg8[%c0_17, %c0_18] : memref<32x1xf32, #tpu.memory_space<vmem>>, vector<32x1xf32>
    %27 = vector.broadcast %26 : vector<32x1xf32> to vector<32x512xf32>
    %28 = arith.mulf %27, %25 : vector<32x512xf32>
    %cst_19 = arith.constant dense<0.000000e+00> : vector<512xf32>
    %29 = vector.multi_reduction <add>, %28, %cst_19 [0] : vector<32x512xf32> to vector<512xf32>
    %30 = vector.shape_cast %29 : vector<512xf32> to vector<1x512xf32>
    %c0_20 = arith.constant 0 : index
    %c0_21 = arith.constant 0 : index
    %31 = vector.load %arg9[%c0_20, %c0_21] : memref<1x1xf32, #tpu.memory_space<vmem>>, vector<1x1xf32>
    %32 = vector.broadcast %31 : vector<1x1xf32> to vector<1x512xf32>
    %33 = arith.addf %30, %32 : vector<1x512xf32>
    %c0_22 = arith.constant 0 : index
    %c0_23 = arith.constant 0 : index
    %34 = vector.load %arg10[%c0_22, %c0_23] : memref<1x512xf32, #tpu.memory_space<vmem>>, vector<1x512xf32>
    tpu.vector_store %arg10[%c0_22, %c0_23], %33 {strides = array<i32>} : memref<1x512xf32, #tpu.memory_space<vmem>>, vector<1x512xf32>,
    return
  }
  func.func @transform_0(%arg0: i32) -> (i32, i32) {
    %c0_i32 = arith.constant 0 : i32
    %c0_i32_0 = arith.constant 0 : i32
    return %c0_i32, %arg0 : i32, i32
  }
  func.func @transform_1(%arg0: i32) -> (i32, i32) {
    %c0_i32 = arith.constant 0 : i32
    %c0_i32_0 = arith.constant 0 : i32
    %c0_i32_1 = arith.constant 0 : i32
    return %c0_i32, %c0_i32_0 : i32, i32
  }
  func.func @transform_2(%arg0: i32) -> (i32, i32) {
    %c0_i32 = arith.constant 0 : i32
    %c0_i32_0 = arith.constant 0 : i32
    %c0_i32_1 = arith.constant 0 : i32
    return %c0_i32, %c0_i32_0 : i32, i32
  }
  func.func @transform_3(%arg0: i32) -> (i32, i32) {
    %c0_i32 = arith.constant 0 : i32
    %c0_i32_0 = arith.constant 0 : i32
    %c0_i32_1 = arith.constant 0 : i32
    return %c0_i32, %c0_i32_0 : i32, i32
  }
  func.func @transform_4(%arg0: i32) -> (i32, i32) {
    %c0_i32 = arith.constant 0 : i32
    %c0_i32_0 = arith.constant 0 : i32
    %c0_i32_1 = arith.constant 0 : i32
    return %c0_i32, %c0_i32_0 : i32, i32
  }
  func.func @transform_5(%arg0: i32) -> (i32, i32) {
    %c0_i32 = arith.constant 0 : i32
    %c0_i32_0 = arith.constant 0 : i32
    %c0_i32_1 = arith.constant 0 : i32
    return %c0_i32, %c0_i32_0 : i32, i32
  }
  func.func @transform_6(%arg0: i32) -> (i32, i32) {
    %c0_i32 = arith.constant 0 : i32
    %c0_i32_0 = arith.constant 0 : i32
    %c0_i32_1 = arith.constant 0 : i32
    return %c0_i32, %c0_i32_0 : i32, i32
  }
  func.func @transform_7(%arg0: i32) -> (i32, i32) {
    %c0_i32 = arith.constant 0 : i32
    %c0_i32_0 = arith.constant 0 : i32
    %c0_i32_1 = arith.constant 0 : i32
    return %c0_i32, %c0_i32_0 : i32, i32
  }
  func.func @transform_8(%arg0: i32) -> (i32, i32) {
    %c0_i32 = arith.constant 0 : i32
    %c0_i32_0 = arith.constant 0 : i32
    %c0_i32_1 = arith.constant 0 : i32
    return %c0_i32, %c0_i32_0 : i32, i32
  }
  func.func @transform_9(%arg0: i32) -> (i32, i32) {
    %c0_i32 = arith.constant 0 : i32
    %c0_i32_0 = arith.constant 0 : i32
    return %c0_i32, %arg0 : i32, i32
  }
}

</mosaic_0001>

<bundles_post_ra>
// kernel: tpu_custom_call.1
= control target key start
LH: loop header
LB: loop body
LE: loop exit
PB: predicated region body
PF: predicated region fallthrough
CT: control target
= control target key end

     0   :  { %s1550_s0 = inlined_call_operand.vmem [shape: f32[1,3000], index: 0, kind: input, shape index: {}]   ;;  %s1551_s1 = inlined_call_operand.vmem [shape: f32[64,1], index: 1, kind: input, shape index: {}]   ;;  %s1552_s2 = inlined_call_operand.vmem [shape: f32[64,1], index: 2, kind: input, shape index: {}]   ;;  %s1553_s3 = inlined_call_operand.vmem [shape: bf16[32,64], index: 3, kind: input, shape index: {}]   ;;  %s1554_s4 = inlined_call_operand.vmem [shape: f32[32,1], index: 4, kind: input, shape index: {}]   ;;  %s1555_s5 = inlined_call_operand.vmem [shape: bf16[32,32], index: 5, kind: input, shape index: {}]   ;;  %s1556_s6 = inlined_call_operand.vmem [shape: f32[32,1], index: 6, kind: input, shape index: {}]   ;;  %s1557_s7 = inlined_call_operand.vmem [shape: f32[32,1], index: 7, kind: input, shape index: {}]   ;;  %s1558_s8 = inlined_call_operand.<no memory space> [shape: f32[1,1], index: 8, kind: input, shape index: {}]   ;;  %s1559_s9 = inlined_call_operand.hbm [shape: f32[1,3000], index: 9, kind: output, shape index: {}]  }
   0x1   :  { %v14_v0 = vstv %s1558_s8 }
   0x2   :  { %15 = vst [vmem:[#allocation2] sm:$0x1] %v14_v0 }
   0x3   :  { %16 = vsyncpa [#allocation4], 0 }
   0x4   :  { %18 = vsyncpa [#allocation4 + $0x1], 0  ;;  %s1292_s11 = smov 0   ;;  %s1294_s12 = smov 0  }
   0x5   :  { %s1296_s13 = smov 0   ;;  %s1298_s14 = smov 0  }
   0x6 LB: > { %s1313_s8 = sadd.s32 4294967295, %s1234_s14   ;;  %s1101_s15 = sadd.s32 4294967294, %s1234_s14   ;;  %s1234_s14 = sphi %s1298_s14, %s1565_s14   ;;  %s1230_s13 = sphi %s1296_s13, %s1564_s13   ;;  %s1226_s12 = sphi %s1294_s12, %s1563_s12   ;;  %s1222_s11 = sphi %s1292_s11, %s1562_s11  }
   0x7   : > { %s1317_s16 = sadd.s32 1, %s1234_s14   ;;  %s225_s17 = sadd.s32 1, %s1230_s13 }
   0x8   : > { %s222_s18 = ssub.s32 %s1234_s14, %s1317_s16  ;;  %p235_p0 = scmp.ne.s32.totalorder %s1230_s13, %s1226_s12 }
   0x9   : > { %p223_p1 = scmp.eq.s32.totalorder %s222_s18, 0  ;;  %p236_p2 = scmp.eq.s32.totalorder %s1313_s8, 5 }
   0xa   : > { %p241_p3 = scmp.ne.s32.totalorder %s1226_s12, %s1222_s11  ;;  %p242_p4 = scmp.eq.s32.totalorder %s1101_s15, 5 }
   0xb   : > { %s1328_s19 = scalar_select %p223_p1, %s1230_s13, %s225_s17  }
   0xc   : > { %p1330_p5 = por %p236_p2, %p235_p0  ;;  %p1334_p6 = por %p242_p4, %p241_p3 }
   0xd   : > { %p1104_p7 = scmp.ge.s32.totalorder %s1234_s14, 1  ;;  %p292_p8 = scmp.lt.s32.totalorder %s1234_s14, 7 }
   0xf   : > { %p293_p9 = pnand %p1104_p7, %p292_p8 }
  0x10   : > { %v436_v1 = vld [vmem:[%s1552_s2] sm:$0xff] (!%p293_p9)  ;;  %v1236_v3 = vmov (!%p293_p9), 0   ;;  %v437_v4 = vld [vmem:[%s1552_s2 + $0x8] sm:$0xff] (!%p293_p9)  ;;  %v338_v6 = vld [vmem:[%s1551_s1 + $0x18] sm:$0xff] (!%p293_p9)  ;;  %s1106_s26 = sshll.u32 (!%p293_p9), %s1313_s8, 2  ;;  %v384_v31 = vlaneseq (!%p293_p9)  ;;  %vm602_vm0 = vcmask (!%p293_p9), 523264  }
  0x11   : > { %296 = sbr.rel (%p293_p9) target bundleno = 685 (0x2ad), region = 56  ;;  %v335_v2 = vld [vmem:[%s1551_s1] sm:$0xff] (!%p293_p9)  ;;  %1167 = vset.pattern.permute.xlu1 (!%p293_p9), %v1236_v3  ;;  %1166 = vset.pattern.permute.xlu0 (!%p293_p9), %v1236_v3  ;;  %v336_v5 = vld [vmem:[%s1551_s1 + $0x8] sm:$0xff] (!%p293_p9)  ;;  %v337_v7 = vld [vmem:[%s1551_s1 + $0x10] sm:$0xff] (!%p293_p9)  ;;  %p328_p10 = scmp.lt.s32.totalorder (!%p293_p9), %s1106_s26, 23  ;;  %vm777_vm1 = vcmask (!%p293_p9), 261120  }
  0x12   : > { %446 = vperm.xlu1 (!%p293_p9), %1167, %v436_v1   ;;  %345 = vperm.xlu0 (!%p293_p9), %1166, %v335_v2   ;;  %v439_v8 = vld [vmem:[%s1552_s2 + $0x18] sm:$0xff] (!%p293_p9)  ;;  %v438_v9 = vld [vmem:[%s1552_s2 + $0x10] sm:$0xff] (!%p293_p9)  ;;  %v340_v10 = vld [vmem:[%s1551_s1 + $0x28] sm:$0xff] (!%p293_p9)  ;;  %v1430_v32 = vshrl.u32 (!%p293_p9), %v384_v31, 7  ;;  %s324_s25 = sand.u32 (!%p293_p9), 1, %s1226_s12   ;;  %s1124_s27 = sshll.u32 (!%p293_p9), %s1313_s8, 6 }
  0x13   : > { %641 = vmatprep.mubr.bf16.mxu0 (!%p293_p9), %v1236_v3  ;;  %694 = vmatprep.mubr.bf16.mxu1 (!%p293_p9), %v1236_v3  ;;  %v339_v11 = vld [vmem:[%s1551_s1 + $0x20] sm:$0xff] (!%p293_p9)  ;;  %v441_v12 = vld [vmem:[%s1552_s2 + $0x28] sm:$0xff] (!%p293_p9)  ;;  %v342_v14 = vld [vmem:[%s1551_s1 + $0x38] sm:$0xff] (!%p293_p9)  ;;  %vm1027_vm2 = vcmp.lt.s32.totalorder (!%p293_p9), %v384_v31, 512  ;;  %s1508_s15 = scalar_lea.hbm (!%p293_p9), %s1559_s9, %s1124_s27  ;;  %s1031_s17 = scalar_lea.sflag (!%p293_p9), [#allocation4], %s324_s25 }
  0x14   : > { %v440_v13 = vld [vmem:[%s1552_s2 + $0x20] sm:$0xff] (!%p293_p9)  ;;  %v341_v15 = vld [vmem:[%s1551_s1 + $0x30] sm:$0xff] (!%p293_p9)  ;;  %v443_v16 = vld [vmem:[%s1552_s2 + $0x38] sm:$0xff] (!%p293_p9)  ;;  %v386_v33 = vsub.s32 (!%p293_p9), 0, %v1430_v32  ;;  %v394_v34 = vsub.s32 (!%p293_p9), 2, %v1430_v32  ;;  %v390_v35 = vsub.s32 (!%p293_p9), 1, %v1430_v32 }
  0x15   : > { %v442_v17 = vld [vmem:[%s1552_s2 + $0x30] sm:$0xff] (!%p293_p9)  ;;  %v569_v18 = vld [vmem:[%s1554_s4 + $0x8] sm:$0xff] (!%p293_p9)  ;;  %v568_v19 = vld [vmem:[%s1554_s4] sm:$0xff] (!%p293_p9)  ;;  %v398_v36 = vsub.s32 (!%p293_p9), 3, %v1430_v32  ;;  %s1238_s8 = smov (!%p293_p9), [#allocation3]  }
  0x16   : > { %451 = vperm.xlu1 (!%p293_p9), %1167, %v437_v4   ;;  %350 = vperm.xlu0 (!%p293_p9), %1166, %v336_v5   ;;  %v571_v20 = vld [vmem:[%s1554_s4 + $0x18] sm:$0xff] (!%p293_p9)  ;;  %v570_v21 = vld [vmem:[%s1554_s4 + $0x10] sm:$0xff] (!%p293_p9)  ;;  %v744_v22 = vld [vmem:[%s1556_s6 + $0x8] sm:$0xff] (!%p293_p9)  ;;  %s1176_s22 = sshll.u32 (!%p293_p9), %s1238_s8, 4  ;;  %s1177_s22 = int_to_ptr.vmem [resolvable:$false] %s1176_s22 }
  0x17   : > { %v743_v23 = vld [vmem:[%s1556_s6] sm:$0xff] (!%p293_p9)  ;;  %v746_v24 = vld [vmem:[%s1556_s6 + $0x18] sm:$0xff] (!%p293_p9)  ;;  %v745_v25 = vld [vmem:[%s1556_s6 + $0x10] sm:$0xff] (!%p293_p9)  ;;  %s1178_s23 = scalar_lea.vmem (!%p293_p9), %s1177_s22, 128 }
  0x18   : > { %v907_v26 = vld [vmem:[%s1557_s7 + $0x8] sm:$0xff]  ;;  %v906_v27 = vld [vmem:[%s1557_s7] sm:$0xff]  ;;  %v909_v28 = vld [vmem:[%s1557_s7 + $0x18] sm:$0xff]  ;;  %s1567_s26 = smov (!%p328_p10, %s1106_s26), 23 }
  0x19   : > { %v908_v29 = vld [vmem:[%s1557_s7 + $0x10] sm:$0xff]  ;;  %v982_v30 = vld [vmem:[#allocation2] sm:$0x1]  ;;  %s330_s29 = scalar_lea.vmem %s1550_s0, %s1567_s26  ;;  %s1105_s26 = sshll.u32 %s324_s25, 2 }
  0x1a   : > { %360 = vperm.xlu1 %1167, %v338_v6   ;;  %355 = vperm.xlu0 %1166, %v337_v7   ;;  %v334_v37 = vld [vmem:[%s330_s29] sm:$0xf]  ;;  %s326_s28 = scalar_lea.vmem [#allocation3], %s1105_s26 }
  0x1b   : > { %v1441_v38 = vrot.slane %v334_v37, %v386_v33  ;;  %v1443_v39 = vrot.slane %v334_v37, %v394_v34  ;;  %v1445_v40 = vrot.slane %v334_v37, %v390_v35  ;;  %v1447_v41 = vrot.slane %v334_v37, %v398_v36  ;;  %s1045_s29 = sshll.u32 %s326_s28, 4  ;;  %s1510_s29 = int_to_ptr.vmem [resolvable:$true] %s1045_s29 }
  0x1c   : > { %s1172_s18 = scalar_lea.vmem %s1510_s29, 64  ;;  %p1179_p0 = scmp.lt.s32.totalorder %s1510_s29, %s1177_s22 }
  0x1d   : > { %p1173_p11 = scmp.ne.s32.totalorder %s1510_s29, %s1172_s18  ;;  %p1180_p1 = scmp.lt.s32.totalorder %s1178_s23, %s1172_s18 }
  0x1e   : > { %461 = vperm.xlu1 %1167, %v439_v8   ;;  %456 = vperm.xlu0 %1166, %v438_v9  }
  0x1f   : > { %p1174_p12 = pnand %p1173_p11, %p1330_p5  ;;  %p1181_p2 = por %p1180_p1, %p1179_p0 }
  0x21   : > { %p1175_p13 = pneg %p1174_p12 }
  0x22   : > { %370 = vperm.xlu1 %1167, %v340_v10   ;;  %365 = vperm.xlu0 %1166, %v339_v11  }
  0x23   : > { %p1182_p3 = pnand %p1181_p2, %p1175_p13 }
  0x26   : > { %471 = vperm.xlu1 %1167, %v441_v12   ;;  %466 = vperm.xlu0 %1166, %v440_v13  }
  0x2a   : > { %380 = vperm.xlu1 %1167, %v342_v14   ;;  %375 = vperm.xlu0 %1166, %v341_v15  }
  0x2e   : > { %481 = vperm.xlu1 %1167, %v443_v16   ;;  %476 = vperm.xlu0 %1166, %v442_v17  }
  0x32   : > { %579 = vperm.xlu1 %1167, %v569_v18   ;;  %574 = vperm.xlu0 %1166, %v568_v19  }
  0x36   : > { %589 = vperm.xlu1 %1167, %v571_v20   ;;  %584 = vperm.xlu0 %1166, %v570_v21  }
  0x3a   : > { %754 = vperm.xlu1 %1167, %v744_v22   ;;  %749 = vperm.xlu0 %1166, %v743_v23  }
  0x3e   : > { %764 = vperm.xlu1 %1167, %v746_v24   ;;  %759 = vperm.xlu0 %1166, %v745_v25  }
  0x42   : > { %917 = vperm.xlu1 %1167, %v907_v26   ;;  %912 = vperm.xlu0 %1166, %v906_v27  }
  0x46   : > { %927 = vperm.xlu1 %1167, %v909_v28   ;;  %922 = vperm.xlu0 %1166, %v908_v29  }
  0x4a   : > { %985 = vperm.xlu0 %1166, %v982_v30  }
  0x91   : > { %v447_v42 = vpop.permute.xlu1 %446  ;;  %v346_v43 = vpop.permute.xlu0 %345 }
  0x92   : > { %v404_v44 = vmul.f32 %v1441_v38, %v346_v43  ;;  %v406_v45 = vmul.f32 %v1443_v39, %v346_v43  ;;  %v405_v46 = vmul.f32 %v1445_v40, %v346_v43  ;;  %v407_v47 = vmul.f32 %v1447_v41, %v346_v43 }
  0x94   : > { %v485_v50 = vadd.f32 %v447_v42, %v405_v46  ;;  %v487_v51 = vadd.f32 %v447_v42, %v407_v47  ;;  %v484_v52 = vadd.f32 %v447_v42, %v404_v44  ;;  %v486_v56 = vadd.f32 %v447_v42, %v406_v45 }
  0x95   : > { %v452_v48 = vpop.permute.xlu1 %451  ;;  %v351_v49 = vpop.permute.xlu0 %350 }
  0x96   : > { %v408_v53 = vmul.f32 %v1441_v38, %v351_v49  ;;  %v410_v54 = vmul.f32 %v1443_v39, %v351_v49  ;;  %v409_v55 = vmul.f32 %v1445_v40, %v351_v49  ;;  %v411_v57 = vmul.f32 %v1447_v41, %v351_v49 }
  0x97   : > { %v517_v0 = vmax.f32 %v485_v50, 0.0  ;;  %v519_v1 = vmax.f32 %v487_v51, 0.0  ;;  %v516_v2 = vmax.f32 %v484_v52, 0.0  ;;  %v518_v4 = vmax.f32 %v486_v56, 0.0 }
  0x98   : > { %v489_v58 = vadd.f32 %v452_v48, %v409_v55  ;;  %v488_v59 = vadd.f32 %v452_v48, %v408_v53  ;;  %v490_v60 = vadd.f32 %v452_v48, %v410_v54  ;;  %v491_v63 = vadd.f32 %v452_v48, %v411_v57 }
  0x99   : > { %v361_v61 = vpop.permute.xlu1 %360  ;;  %v356_v62 = vpop.permute.xlu0 %355 }
  0x9a   : > { %v416_v5 = vmul.f32 %v1441_v38, %v361_v61  ;;  %v417_v6 = vmul.f32 %v1445_v40, %v361_v61  ;;  %v418_v7 = vmul.f32 %v1443_v39, %v361_v61  ;;  %v419_v8 = vmul.f32 %v1447_v41, %v361_v61 }
  0x9b   : > { %v521_v9 = vmax.f32 %v489_v58, 0.0  ;;  %v523_v10 = vmax.f32 %v491_v63, 0.0  ;;  %v520_v11 = vmax.f32 %v488_v59, 0.0  ;;  %v522_v12 = vmax.f32 %v490_v60, 0.0 }
  0x9c   : > { %v412_v13 = vmul.f32 %v1441_v38, %v356_v62  ;;  %v413_v14 = vmul.f32 %v1445_v40, %v356_v62  ;;  %v414_v15 = vmul.f32 %v1443_v39, %v356_v62  ;;  %v415_v16 = vmul.f32 %v1447_v41, %v356_v62 }
  0x9d   : > { %v462_v17 = vpop.permute.xlu1 %461  ;;  %v457_v18 = vpop.permute.xlu0 %456  ;;  %v553_v27 = vpack.c.bf16 %v521_v9, %v517_v0  ;;  %v555_v28 = vpack.c.bf16 %v523_v10, %v519_v1  ;;  %v552_v29 = vpack.c.bf16 %v520_v11, %v516_v2  ;;  %v554_v30 = vpack.c.bf16 %v522_v12, %v518_v4 }
  0x9e   : > { %v496_v19 = vadd.f32 %v462_v17, %v416_v5  ;;  %v497_v20 = vadd.f32 %v462_v17, %v417_v6  ;;  %v498_v21 = vadd.f32 %v462_v17, %v418_v7  ;;  %v499_v22 = vadd.f32 %v462_v17, %v419_v8 }
  0x9f   : > { %v492_v23 = vadd.f32 %v457_v18, %v412_v13  ;;  %v493_v24 = vadd.f32 %v457_v18, %v413_v14  ;;  %v494_v25 = vadd.f32 %v457_v18, %v414_v15  ;;  %v495_v26 = vadd.f32 %v457_v18, %v415_v16  ;;  %609 = vmatprep.subr.bf16.mxu0 %v553_v27 }
  0xa0   : > { %v529_v37 = vmax.f32 %v497_v20, 0.0  ;;  %v531_v43 = vmax.f32 %v499_v22, 0.0  ;;  %662 = vmatprep.subr.bf16.mxu1 %v555_v28  ;;  %610 = vmatpush1.bf16.msra.mxu0 %v552_v29  ;;  %v528_v50 = vmax.f32 %v496_v19, 0.0  ;;  %v530_v60 = vmax.f32 %v498_v21, 0.0 }
  0xa1   : > { %v371_v34 = vpop.permute.xlu1 %370  ;;  %v366_v35 = vpop.permute.xlu0 %365  ;;  %v525_v36 = vmax.f32 %v493_v24, 0.0  ;;  %v527_v42 = vmax.f32 %v495_v26, 0.0  ;;  %v524_v46 = vmax.f32 %v492_v23, 0.0  ;;  %663 = vmatpush1.bf16.msra.mxu1 %v554_v30  ;;  %v526_v59 = vmax.f32 %v494_v25, 0.0 }
  0xa2   : > { %v424_v44 = vmul.f32 %v1441_v38, %v371_v34  ;;  %v425_v45 = vmul.f32 %v1445_v40, %v371_v34  ;;  %v426_v47 = vmul.f32 %v1443_v39, %v371_v34  ;;  %v427_v48 = vmul.f32 %v1447_v41, %v371_v34 }
  0xa3   : > { %v420_v49 = vmul.f32 %v1441_v38, %v366_v35  ;;  %v421_v51 = vmul.f32 %v1445_v40, %v366_v35  ;;  %v422_v52 = vmul.f32 %v1443_v39, %v366_v35  ;;  %v557_v53 = vpack.c.bf16 %v529_v37, %v525_v36 }
  0xa4   : > { %v559_v54 = vpack.c.bf16 %v531_v43, %v527_v42  ;;  %v423_v55 = vmul.f32 %v1447_v41, %v366_v35  ;;  %v556_v58 = vpack.c.bf16 %v528_v50, %v524_v46  ;;  %v558_v6 = vpack.c.bf16 %v530_v60, %v526_v59 }
  0xa5   : > { %v472_v56 = vpop.permute.xlu1 %471  ;;  %v467_v57 = vpop.permute.xlu0 %466  ;;  %611 = vmatprep.subr.bf16.mxu0 %v557_v53 }
  0xa6   : > { %664 = vmatprep.subr.bf16.mxu1 %v559_v54  ;;  %v504_v61 = vadd.f32 %v472_v56, %v424_v44  ;;  %v505_v62 = vadd.f32 %v472_v56, %v425_v45  ;;  %v506_v63 = vadd.f32 %v472_v56, %v426_v47  ;;  %v507_v0 = vadd.f32 %v472_v56, %v427_v48  ;;  %v1168_v54 = vld [vmem:[%s1553_s3] sm:$0xff]  }
  0xa7   : > { %v500_v1 = vadd.f32 %v467_v57, %v420_v49  ;;  %v501_v2 = vadd.f32 %v467_v57, %v421_v51  ;;  %v502_v4 = vadd.f32 %v467_v57, %v422_v52  ;;  %612 = vmatpush1.bf16.msra.mxu0 %v556_v58  ;;  %v503_v5 = vadd.f32 %v467_v57, %v423_v55  ;;  %v1169_v55 = vld [vmem:[%s1553_s3 + $0x8] sm:$0xff]  }
  0xa8   : > { %v537_v7 = vmax.f32 %v505_v62, 0.0  ;;  %v536_v8 = vmax.f32 %v504_v61, 0.0  ;;  %665 = vmatpush1.bf16.msra.mxu1 %v558_v6  ;;  %v539_v13 = vmax.f32 %v507_v0, 0.0  ;;  %v538_v22 = vmax.f32 %v506_v63, 0.0 }
  0xa9   : > { %v381_v9 = vpop.permute.xlu1 %380  ;;  %v376_v10 = vpop.permute.xlu0 %375  ;;  %v533_v11 = vmax.f32 %v501_v2, 0.0  ;;  %v532_v12 = vmax.f32 %v500_v1, 0.0  ;;  %v534_v14 = vmax.f32 %v502_v4, 0.0  ;;  %v535_v20 = vmax.f32 %v503_v5, 0.0 }
  0xaa   : > { %v432_v15 = vmul.f32 %v1441_v38, %v381_v9  ;;  %v433_v16 = vmul.f32 %v1445_v40, %v381_v9  ;;  %v434_v17 = vmul.f32 %v1443_v39, %v381_v9  ;;  %v435_v18 = vmul.f32 %v1447_v41, %v381_v9 }
  0xab   : > { %v561_v19 = vpack.c.bf16 %v537_v7, %v533_v11  ;;  %v560_v21 = vpack.c.bf16 %v536_v8, %v532_v12  ;;  %v428_v23 = vmul.f32 %v1441_v38, %v376_v10  ;;  %v429_v24 = vmul.f32 %v1445_v40, %v376_v10 }
  0xac   : > { %v430_v25 = vmul.f32 %v1443_v39, %v376_v10  ;;  %v431_v26 = vmul.f32 %v1447_v41, %v376_v10  ;;  %v563_v29 = vpack.c.bf16 %v539_v13, %v535_v20  ;;  %v562_v44 = vpack.c.bf16 %v538_v22, %v534_v14 }
  0xad   : > { %v482_v27 = vpop.permute.xlu1 %481  ;;  %v477_v28 = vpop.permute.xlu0 %476  ;;  %613 = vmatprep.subr.bf16.mxu0 %v561_v19 }
  0xae   : > { %v512_v30 = vadd.f32 %v482_v27, %v432_v15  ;;  %v513_v34 = vadd.f32 %v482_v27, %v433_v16  ;;  %v514_v35 = vadd.f32 %v482_v27, %v434_v17  ;;  %v515_v36 = vadd.f32 %v482_v27, %v435_v18  ;;  %614 = vmatpush1.bf16.msra.mxu0 %v560_v21 }
  0xaf   : > { %v508_v37 = vadd.f32 %v477_v28, %v428_v23  ;;  %v509_v42 = vadd.f32 %v477_v28, %v429_v24  ;;  %v510_v43 = vadd.f32 %v477_v28, %v430_v25  ;;  %666 = vmatprep.subr.bf16.mxu1 %v563_v29  ;;  %v511_v38 = vadd.f32 %v477_v28, %v431_v26 }
  0xb0   : > { %v545_v40 = vmax.f32 %v513_v34, 0.0  ;;  %v544_v45 = vmax.f32 %v512_v30, 0.0  ;;  %v547_v46 = vmax.f32 %v515_v36, 0.0  ;;  %667 = vmatpush1.bf16.msra.mxu1 %v562_v44  ;;  %v546_v49 = vmax.f32 %v514_v35, 0.0 }
  0xb1   : > { %v541_v39 = vmax.f32 %v509_v42, 0.0  ;;  %v540_v41 = vmax.f32 %v508_v37, 0.0  ;;  %v542_v47 = vmax.f32 %v510_v43, 0.0  ;;  %v543_v48 = vmax.f32 %v511_v38, 0.0  ;;  %v580_v56 = vpop.permute.xlu1 %579  ;;  %v575_v57 = vpop.permute.xlu0 %574 }
  0xb3   : > { %v565_v50 = vpack.c.bf16 %v545_v40, %v541_v39  ;;  %v564_v51 = vpack.c.bf16 %v544_v45, %v540_v41  ;;  %v567_v52 = vpack.c.bf16 %v547_v46, %v543_v48  ;;  %v566_v53 = vpack.c.bf16 %v546_v49, %v542_v47 }
  0xb5   : > { %615 = vmatprep.subr.bf16.mxu0 %v565_v50  ;;  %668 = vmatprep.subr.bf16.mxu1 %v567_v52  ;;  %v590_v17 = vpop.permute.xlu1 %589  ;;  %v585_v21 = vpop.permute.xlu0 %584 }
  0xb6   : > { %616 = vmatpush1.bf16.msra.mxu0 %v564_v51  ;;  %669 = vmatpush1.bf16.msra.mxu1 %v566_v53 }
  0xb9   : > { %1109 = vmatmul.mubr.msk.bf16.vlgmr.msra.gmra.mrb[0].mxu0 %vm602_vm0, %v1168_v54  ;;  %1111 = vmatmul.mubr.msk.bf16.vlgmr.msra.gmra.mrb[0].mxu1 %vm602_vm0, %v1168_v54 }
  0xba   : > { %651 = vmatprep.mubr.bf16.mxu0 %v1236_v3  ;;  %704 = vmatprep.mubr.bf16.mxu1 %v1236_v3 }
  0xc1   : > { %1110 = vmatmul.mubr.msk.bf16.gmra.mrb[4].mxu0 %vm602_vm0, %v1169_v55  ;;  %1112 = vmatmul.mubr.msk.bf16.gmra.mrb[4].mxu1 %vm602_vm0, %v1169_v55 }
  0xc2   : > { %816 = vmatprep.mubr.bf16.mxu0 %v1236_v3  ;;  %869 = vmatprep.mubr.bf16.mxu1 %v1236_v3 }
 0x18c   : > { %v643_v58 = vpop.f32.mrb[0].mxu0  ;;  %v696_v60 = vpop.f32.mrb[0].mxu1 }
 0x18d   : > { %v644_v59 = vadd.f32 %v643_v58, %v575_v57  ;;  %v645_v61 = vpop.f32.mrb[1].mxu0  ;;  %v697_v62 = vadd.f32 %v696_v60, %v575_v57  ;;  %v698_v0 = vpop.f32.mrb[1].mxu1 }
 0x18e   : > { %v646_v63 = vadd.f32 %v645_v61, %v575_v57  ;;  %v647_v1 = vpop.f32.mrb[2].mxu0  ;;  %v699_v2 = vadd.f32 %v698_v0, %v575_v57  ;;  %v700_v5 = vpop.f32.mrb[2].mxu1  ;;  %v1171_v57 = vld [vmem:[%s1555_s5 + $0x8] sm:$0xff]  }
 0x18f   : > { %v648_v4 = vadd.f32 %v647_v1, %v580_v56  ;;  %v649_v6 = vpop.f32.mrb[3].mxu0  ;;  %v701_v7 = vadd.f32 %v700_v5, %v580_v56  ;;  %v702_v9 = vpop.f32.mrb[3].mxu1  ;;  %v715_v10 = vmax.f32 %v644_v59, 0.0  ;;  %v717_v13 = vmax.f32 %v697_v62, 0.0 }
 0x190   : > { %v650_v8 = vadd.f32 %v649_v6, %v580_v56  ;;  %v703_v12 = vadd.f32 %v702_v9, %v580_v56  ;;  %v716_v14 = vmax.f32 %v646_v63, 0.0  ;;  %v718_v18 = vmax.f32 %v699_v2, 0.0  ;;  %v1170_v56 = vld [vmem:[%s1555_s5] sm:$0xff]   ;;  %v755_v58 = vpop.permute.xlu1 %754  ;;  %v750_v59 = vpop.permute.xlu0 %749 }
 0x191   : > { %v719_v11 = vmax.f32 %v648_v4, 0.0  ;;  %v721_v15 = vmax.f32 %v701_v7, 0.0 }
 0x192   : > { %v720_v16 = vmax.f32 %v650_v8, 0.0  ;;  %v722_v20 = vmax.f32 %v703_v12, 0.0 }
 0x193   : > { %v735_v19 = vpack.c.bf16 %v719_v11, %v715_v10  ;;  %v737_v22 = vpack.c.bf16 %v721_v15, %v717_v13 }
 0x194   : > { %v736_v23 = vpack.c.bf16 %v720_v16, %v716_v14  ;;  %v653_v24 = vpop.f32.mrb[4].mxu0  ;;  %v738_v25 = vpack.c.bf16 %v722_v20, %v718_v18  ;;  %v706_v27 = vpop.f32.mrb[4].mxu1 }
 0x195   : > { %v654_v26 = vadd.f32 %v653_v24, %v585_v21  ;;  %v655_v28 = vpop.f32.mrb[5].mxu0  ;;  %v707_v29 = vadd.f32 %v706_v27, %v585_v21  ;;  %v708_v34 = vpop.f32.mrb[5].mxu1 }
 0x196   : > { %v656_v30 = vadd.f32 %v655_v28, %v585_v21  ;;  %v657_v35 = vpop.f32.mrb[6].mxu0  ;;  %784 = vmatprep.subr.bf16.mxu0 %v736_v23  ;;  %v709_v36 = vadd.f32 %v708_v34, %v585_v21  ;;  %v710_v42 = vpop.f32.mrb[6].mxu1  ;;  %837 = vmatprep.subr.bf16.mxu1 %v738_v25 }
 0x197   : > { %v658_v37 = vadd.f32 %v657_v35, %v590_v17  ;;  %v659_v43 = vpop.f32.mrb[7].mxu0  ;;  %785 = vmatpush1.bf16.msra.mxu0 %v735_v19  ;;  %v711_v38 = vadd.f32 %v710_v42, %v590_v17  ;;  %v712_v40 = vpop.f32.mrb[7].mxu1  ;;  %838 = vmatpush1.bf16.msra.mxu1 %v737_v22  ;;  %v723_v45 = vmax.f32 %v654_v26, 0.0  ;;  %v725_v41 = vmax.f32 %v707_v29, 0.0 }
 0x198   : > { %v660_v44 = vadd.f32 %v659_v43, %v590_v17  ;;  %v713_v46 = vadd.f32 %v712_v40, %v590_v17  ;;  %v724_v47 = vmax.f32 %v656_v30, 0.0  ;;  %v726_v50 = vmax.f32 %v709_v36, 0.0  ;;  %v765_v60 = vpop.permute.xlu1 %764  ;;  %v760_v61 = vpop.permute.xlu0 %759 }
 0x199   : > { %v727_v39 = vmax.f32 %v658_v37, 0.0  ;;  %v729_v48 = vmax.f32 %v711_v38, 0.0 }
 0x19a   : > { %v728_v49 = vmax.f32 %v660_v44, 0.0  ;;  %v730_v52 = vmax.f32 %v713_v46, 0.0 }
 0x19b   : > { %v739_v51 = vpack.c.bf16 %v727_v39, %v723_v45  ;;  %v741_v53 = vpack.c.bf16 %v729_v48, %v725_v41 }
 0x19c   : > { %v740_v54 = vpack.c.bf16 %v728_v49, %v724_v47  ;;  %v742_v55 = vpack.c.bf16 %v730_v52, %v726_v50  ;;  %v918_v19 = vpop.permute.xlu1 %917  ;;  %v913_v20 = vpop.permute.xlu0 %912 }
 0x19e   : > { %786 = vmatprep.subr.bf16.mxu0 %v740_v54  ;;  %839 = vmatprep.subr.bf16.mxu1 %v742_v55 }
 0x19f   : > { %787 = vmatpush1.bf16.msra.mxu0 %v739_v51  ;;  %840 = vmatpush1.bf16.msra.mxu1 %v741_v53 }
 0x1a0   : > { %v923_v52 = vpop.permute.xlu0 %922 }
 0x1a2   : > { %1115 = vmatmul.mubr.msk.bf16.vlgmr.msra.gmra.mrb[8].mxu0 %vm777_vm1, %v1170_v56  ;;  %1117 = vmatmul.mubr.msk.bf16.vlgmr.msra.gmra.mrb[8].mxu1 %vm777_vm1, %v1170_v56 }
 0x1a3   : > { %826 = vmatprep.mubr.bf16.mxu0 %v1236_v3  ;;  %879 = vmatprep.mubr.bf16.mxu1 %v1236_v3 }
 0x1aa   : > { %1116 = vmatmul.mubr.msk.bf16.gmra.mrb[12].mxu0 %vm777_vm1, %v1171_v57  ;;  %1118 = vmatmul.mubr.msk.bf16.gmra.mrb[12].mxu1 %vm777_vm1, %v1171_v57 }
 0x275   : > { %v818_v62 = vpop.f32.mrb[8].mxu0  ;;  %v871_v0 = vpop.f32.mrb[8].mxu1 }
 0x276   : > { %v819_v63 = vadd.f32 %v818_v62, %v750_v59  ;;  %v820_v1 = vpop.f32.mrb[9].mxu0  ;;  %v872_v2 = vadd.f32 %v871_v0, %v750_v59  ;;  %v873_v5 = vpop.f32.mrb[9].mxu1 }
 0x277   : > { %v821_v4 = vadd.f32 %v820_v1, %v750_v59  ;;  %v822_v6 = vpop.f32.mrb[10].mxu0  ;;  %v874_v3 = vadd.f32 %v873_v5, %v750_v59  ;;  %v875_v9 = vpop.f32.mrb[10].mxu1 }
 0x278   : > { %v890_v7 = vmax.f32 %v819_v63, 0.0  ;;  %v823_v8 = vadd.f32 %v822_v6, %v755_v58  ;;  %v824_v10 = vpop.f32.mrb[11].mxu0  ;;  %v892_v11 = vmax.f32 %v872_v2, 0.0  ;;  %v876_v13 = vadd.f32 %v875_v9, %v755_v58  ;;  %v877_v15 = vpop.f32.mrb[11].mxu1 }
 0x279   : > { %v891_v12 = vmax.f32 %v821_v4, 0.0  ;;  %v825_v14 = vadd.f32 %v824_v10, %v755_v58  ;;  %v893_v16 = vmax.f32 %v874_v3, 0.0  ;;  %v878_v18 = vadd.f32 %v877_v15, %v755_v58  ;;  %v928_v0 = vpop.permute.xlu1 %927 }
 0x27a   : > { %v894_v17 = vmax.f32 %v823_v8, 0.0  ;;  %v896_v21 = vmax.f32 %v876_v13, 0.0  ;;  %v930_v23 = vmul.f32 %v913_v20, %v890_v7  ;;  %v932_v26 = vmul.f32 %v913_v20, %v892_v11 }
 0x27b   : > { %v895_v22 = vmax.f32 %v825_v14, 0.0  ;;  %v897_v25 = vmax.f32 %v878_v18, 0.0  ;;  %v931_v27 = vmul.f32 %v913_v20, %v891_v12  ;;  %v933_v34 = vmul.f32 %v913_v20, %v893_v16 }
 0x27c   : > { %v934_v24 = vmul.f32 %v918_v19, %v894_v17  ;;  %v936_v28 = vmul.f32 %v918_v19, %v896_v21 }
 0x27d   : > { %v935_v29 = vmul.f32 %v918_v19, %v895_v22  ;;  %v828_v30 = vpop.f32.mrb[12].mxu0  ;;  %v937_v36 = vmul.f32 %v918_v19, %v897_v25  ;;  %v881_v42 = vpop.f32.mrb[12].mxu1 }
 0x27e   : > { %v946_v35 = vadd.f32 %v934_v24, %v930_v23  ;;  %v829_v37 = vadd.f32 %v828_v30, %v760_v61  ;;  %v830_v43 = vpop.f32.mrb[13].mxu0  ;;  %v964_v38 = vadd.f32 %v936_v28, %v932_v26  ;;  %v882_v40 = vadd.f32 %v881_v42, %v760_v61  ;;  %v883_v39 = vpop.f32.mrb[13].mxu1 }
 0x27f   : > { %v955_v44 = vadd.f32 %v935_v29, %v931_v27  ;;  %v831_v45 = vadd.f32 %v830_v43, %v760_v61  ;;  %v832_v46 = vpop.f32.mrb[14].mxu0  ;;  %v973_v41 = vadd.f32 %v937_v36, %v933_v34  ;;  %v884_v48 = vadd.f32 %v883_v39, %v760_v61  ;;  %v885_v50 = vpop.f32.mrb[14].mxu1 }
 0x280   : > { %v898_v47 = vmax.f32 %v829_v37, 0.0  ;;  %v833_v49 = vadd.f32 %v832_v46, %v765_v60  ;;  %v834_v51 = vpop.f32.mrb[15].mxu0  ;;  %v900_v53 = vmax.f32 %v882_v40, 0.0  ;;  %v886_v55 = vadd.f32 %v885_v50, %v765_v60  ;;  %v887_v57 = vpop.f32.mrb[15].mxu1 }
 0x281   : > { %v899_v54 = vmax.f32 %v831_v45, 0.0  ;;  %v835_v56 = vadd.f32 %v834_v51, %v765_v60  ;;  %v901_v59 = vmax.f32 %v884_v48, 0.0  ;;  %v888_v63 = vadd.f32 %v887_v57, %v765_v60 }
 0x282   : > { %v938_v58 = vmul.f32 %v923_v52, %v898_v47  ;;  %v902_v62 = vmax.f32 %v833_v49, 0.0  ;;  %v940_v1 = vmul.f32 %v923_v52, %v900_v53  ;;  %v904_v4 = vmax.f32 %v886_v55, 0.0 }
 0x283   : > { %v939_v2 = vmul.f32 %v923_v52, %v899_v54  ;;  %v903_v5 = vmax.f32 %v835_v56, 0.0  ;;  %v941_v61 = vmul.f32 %v923_v52, %v901_v59  ;;  %v905_v3 = vmax.f32 %v888_v63, 0.0 }
 0x284   : > { %v947_v6 = vadd.f32 %v946_v35, %v938_v58  ;;  %v942_v7 = vmul.f32 %v928_v0, %v902_v62  ;;  %v965_v8 = vadd.f32 %v964_v38, %v940_v1  ;;  %v944_v10 = vmul.f32 %v928_v0, %v904_v4  ;;  %v986_v35 = vpop.permute.xlu0 %985 }
 0x285   : > { %v956_v9 = vadd.f32 %v955_v44, %v939_v2  ;;  %v943_v11 = vmul.f32 %v928_v0, %v903_v5  ;;  %v974_v12 = vadd.f32 %v973_v41, %v941_v61  ;;  %v945_v14 = vmul.f32 %v928_v0, %v905_v3 }
 0x286   : > { %v948_v13 = vadd.f32 %v947_v6, %v942_v7  ;;  %v966_v15 = vadd.f32 %v965_v8, %v944_v10  ;;  %v1237_v28 = vmov 1966171168   ;;  %v991_v45 = vrot.slane %v986_v35, %v386_v33 }
 0x287   : > { %v957_v16 = vadd.f32 %v956_v9, %v943_v11  ;;  %v975_v60 = vadd.f32 %v974_v12, %v945_v14  ;;  %v1003_v29 = vunpack.c.l.s4 %v1237_v28 }
 0x288   : > { %v949_v17 = vrot.slane %v948_v13, 4  ;;  %v967_v18 = vrot.slane %v966_v15, 4 }
 0x289   : > { %v958_v19 = vrot.slane %v957_v16, 4  ;;  %v976_v21 = vrot.slane %v975_v60, 4  ;;  %v1004_v40 = vunpack.c.0.s8 %v1003_v29 }
 0x28a   : > { %v950_v20 = vadd.f32 %v949_v17, %v948_v13  ;;  %v968_v22 = vadd.f32 %v967_v18, %v966_v15 }
 0x28b   : > { %v959_v23 = vadd.f32 %v958_v19, %v957_v16  ;;  %v977_v25 = vadd.f32 %v976_v21, %v975_v60  ;;  %v1007_v52 = vsub.s32 %v1004_v40, %v1430_v32 }
 0x28c   : > { %v951_v24 = vrot.slane %v950_v20, 2  ;;  %v969_v26 = vrot.slane %v968_v22, 2 }
 0x28d   : > { %v960_v27 = vrot.slane %v959_v23, 2  ;;  %v978_v34 = vrot.slane %v977_v25, 2 }
 0x28e   : > { %v952_v30 = vadd.f32 %v951_v24, %v950_v20  ;;  %v970_v36 = vadd.f32 %v969_v26, %v968_v22 }
 0x28f   : > { %v961_v37 = vadd.f32 %v960_v27, %v959_v23  ;;  %v979_v43 = vadd.f32 %v978_v34, %v977_v25 }
 0x290   : > { %v953_v42 = vrot.slane %v952_v30, 1  ;;  %v971_v38 = vrot.slane %v970_v36, 1 }
 0x291   : > { %v962_v44 = vrot.slane %v961_v37, 1  ;;  %v980_v46 = vrot.slane %v979_v43, 1 }
 0x292   : > { %v954_v39 = vadd.f32 %v953_v42, %v952_v30  ;;  %v972_v41 = vadd.f32 %v971_v38, %v970_v36 }
 0x293   : > { %v963_v47 = vadd.f32 %v962_v44, %v961_v37  ;;  %v981_v49 = vadd.f32 %v980_v46, %v979_v43 }
 0x294   : > { %v992_v48 = vadd.f32 %v991_v45, %v954_v39  ;;  %v994_v50 = vadd.f32 %v991_v45, %v972_v41 }
 0x295   : > { %v993_v51 = vadd.f32 %v991_v45, %v963_v47  ;;  %v995_v53 = vadd.f32 %v991_v45, %v981_v49 }
 0x297   : > { %v1000_v54 = vcombine.low %v992_v48, %v993_v51  ;;  %v1001_v55 = vcombine.low %v994_v50, %v995_v53 }
 0x299   : > { %v1008_v56 = vrot.slane %v1000_v54, %v1007_v52  ;;  %v1015_v57 = vrot.slane %v1001_v55, %v1007_v52 }
 0x29b   : > { %v1016_v33 = vcombine.low %v1008_v56, %v1015_v57 }
 0x29d   : > { %v1023_v58 = vrot.slane %v1016_v33, %v1007_v52 }
 0x29f   : > { %1029 = vst.msk [vmem:[%s326_s28] sm:$0xf] %vm1027_vm2, %v1023_v58 }
 0x2a0   : > { %1185 = shalt.err (!%p1182_p3)
}
 0x2a1   : > { %s1186_s24 = scalar_lea.hbm %s1508_s15, 64  ;;  %s1190_s27 = scalar_lea.hbm %s1559_s9, 384 }
 0x2a2   : > { %p1187_p4 = scmp.ne.s32.totalorder %s1508_s15, %s1186_s24  ;;  %p1191_p9 = scmp.lt.u32.totalorder %s1508_s15, %s1559_s9 }
 0x2a3   : > { %p1192_p10 = scmp.lt.u32.totalorder %s1190_s27, %s1186_s24  ;;  %p1194_p12 = scmp.lt.u32.totalorder %s1186_s24, %s1508_s15 }
 0x2a4   : > { %p1188_p7 = pnand %p1187_p4, %p1330_p5 }
 0x2a5   : > { %p1193_p11 = por %p1192_p10, %p1191_p9 }
 0x2a6   : > { %p1189_p8 = pneg %p1188_p7 }
 0x2a7   : > { %p1195_p13 = por %p1194_p12, %p1193_p11 }
 0x2a9   : > { %p1196_p0 = pnand %p1195_p13, %p1189_p8 }
 0x2ab   : > { %1199 = shalt.err (!%p1196_p0)
}
 0x2ac   : > { %1125 = dma.vmem_to_hbm [thread:$0]  (%p1330_p5), %s1510_s29, 64, %s1508_s15, %s1031_s17  }
 0x2ad PF: > { %p1131_p1 = scmp.ge.s32.totalorder %s1234_s14, 2  ;;  %s1057_s10 = sand.u32 1, %s1222_s11  }
 0x2ae   : > { %s1058_s18 = scalar_lea.sflag [#allocation4], %s1057_s10 }
 0x2af   : > { %p1128_p2 = pnand %p1131_p1, %p1334_p6 }
 0x2b1   : > { %1217 = dma.done.wait (!%p1128_p2), %s1058_s18, 64  }
 0x2b2   : > { %1219 = vsyncadd (!%p1128_p2), %s1058_s18, 4294967232  ;;  %p21_p3 = scmp.ge.s32.totalorder %s1317_s16, 8   ;;  %s1562_s11 = smov %s1226_s12 }
 0x2b3   : > { %s1563_s12 = smov %s1230_s13  ;;  %s1564_s13 = smov %s1328_s19 }
 0x2b4   : > { %s1565_s14 = smov %s1317_s16  ;;  %23 = sbr.rel (!%p21_p3) target bundleno = 6 (0x6), region = 91 }
 0x2bb   :  { %1063 = vsyncpa [#allocation4], 1 }
 0x2bc   :  { %1065 = vsyncpa [#allocation4 + $0x1], 1 }

</bundles_post_ra>
